<compile_context>
chip_gen: v7x
topology: tpu7x:2x2x1
jax: 0.10.0
libtpu: 0.0.40
codegen_flags: <defaults>
</compile_context>

<pallas_src>
import functools
import math

import numpy as np

import jax
import jax.numpy as jnp
from jax.experimental import pallas as pl
from jax.experimental.pallas import tpu as pltpu


# --------------------------------------------------------------------------- #
# Kernel
# --------------------------------------------------------------------------- #
def _input_layer_kernel(z_ref, w_ref, gb_ref, g_ref, gt_ref, o_ref, *,
                        n_cols: int, inv_n: float, eps: float,
                        elementwise_bf16: bool):
    """One channel-tile of fused convT(1x1-input) + BatchNorm(train) + GLU.

    Per grid step (N = channels_per_tile * hw, tc = channels_per_tile):
      z   : (Bp, Z)      f32  latent vectors (cast to bf16 for the MXU)
      w   : (Z, 2N)      bf16 interleaved [value | gate] weight columns
      gb  : (1, 4, tc)   f32  [gamma_a; beta_a; gamma_b; beta_b]
      G   : (N, tc)      f32  one-hot column->channel grouping (constant)
      GT  : (tc, N)      f32  its transpose (constant)
      o   : (Bp, N)           output tile (value channels, GLU applied)
    """
    N = n_cols
    z = z_ref[...].astype(jnp.bfloat16)

    # ConvTranspose2d(k=4, s=1, p=0) on a 1x1 spatial input == a plain matmul.
    # One wide MXU matmul covers both the value and gate halves of this tile.
    y = jnp.dot(z, w_ref[...], preferred_element_type=jnp.float32)     # (Bp, 2N)
    ya = y[:, :N]                                                       # value
    yb = y[:, N:]                                                       # gate

    # --- BatchNorm2d (training mode) statistics (kept in f32) --------------
    # Column sums / sums-of-squares of both halves stacked so the per-channel
    # grouping reduction is a SINGLE small MXU op against the constant G.
    s = jnp.concatenate(
        [jnp.sum(ya, axis=0, keepdims=True),
         jnp.sum(ya * ya, axis=0, keepdims=True),
         jnp.sum(yb, axis=0, keepdims=True),
         jnp.sum(yb * yb, axis=0, keepdims=True)], axis=0)              # (4, N)

    stats = jnp.dot(s, g_ref[...], preferred_element_type=jnp.float32) * inv_n
    mean_a, ex2_a = stats[0:1], stats[1:2]                              # (1, tc)
    mean_b, ex2_b = stats[2:3], stats[3:4]
    var_a = ex2_a - mean_a * mean_a                                     # biased
    var_b = ex2_b - mean_b * mean_b

    gb = gb_ref[...]                                                    # (1,4,tc)
    gamma_a, beta_a = gb[0, 0:1, :], gb[0, 1:2, :]
    gamma_b, beta_b = gb[0, 2:3, :], gb[0, 3:4, :]

    # Fold BN affine into per-channel scale/shift at narrow (4, tc) width.
    scale_a = gamma_a * jax.lax.rsqrt(var_a + eps)
    shift_a = beta_a - mean_a * scale_a
    scale_b = gamma_b * jax.lax.rsqrt(var_b + eps)
    shift_b = beta_b - mean_b * scale_b
    coeff = jnp.concatenate([scale_a, shift_a, scale_b, shift_b], axis=0)  # (4, tc)

    # One MXU op broadcasts scale/shift back to full column width.
    bc = jnp.dot(coeff, gt_ref[...], preferred_element_type=jnp.float32)   # (4, N)

    if elementwise_bf16:
        # v6e/v7x: packed bf16 vregs halve the VPU/EUP op count for apply+gate.
        ya = ya.astype(jnp.bfloat16)
        yb = yb.astype(jnp.bfloat16)
        bc = bc.astype(jnp.bfloat16)

    a_bn = ya * bc[0:1, :] + bc[1:2, :]
    b_bn = yb * bc[2:3, :] + bc[3:4, :]

    # GLU over channels (value half gated by sigmoid of gate half).
    o_ref[...] = (a_bn * jax.nn.sigmoid(b_bn)).astype(o_ref.dtype)


# --------------------------------------------------------------------------- #
# Host-side helpers
# --------------------------------------------------------------------------- #
def _device_info():
    try:
        kind = jax.devices()[0].device_kind.lower()
    except Exception:
        kind = ""
    is_v5 = "v5" in kind
    is_v7 = "v7" in kind
    vmem_cap = (64 << 20) if is_v7 else (128 << 20)   # per-TensorCore VMEM
    return is_v5, is_v7, vmem_cap


def _pick_channels_per_tile(c_pad, hw, max_cols, prefer_even_tiles=False):
    """Largest lane-aligned divisor of c_pad whose column width <= max_cols."""
    q = 128 // math.gcd(hw, 128)        # channels needed per 128-lane chunk
    cands = [tc for tc in range(q, c_pad + 1, q)
             if c_pad % tc == 0 and tc * hw <= max_cols]
    if not cands:
        return q                        # minimal lane-aligned tile, always valid
    if prefer_even_tiles:               # keep both v7x TensorCores busy
        even = [tc for tc in cands if (c_pad // tc) % 2 == 0]
        if even:
            return max(even)
    return max(cands)


def input_layer_forward(latent_z, w_sn_flat, gamma, beta, *, H=4, W=4,
                        channels_per_tile=None, out_dtype=jnp.bfloat16,
                        elementwise_bf16=None):
    """latent_z: (B, Z) f32.
    w_sn_flat: (Z, C2*H*W) spectrally-normalized ConvTranspose2d weight,
               flattened channel-major (col = c*H*W + h*W + w).
    gamma/beta: (C2,) BatchNorm2d affine parameters.
    Returns NCHW (B, C2//2, H, W) in out_dtype."""
    B, Z = latent_z.shape
    hw = H * W
    C2 = w_sn_flat.shape[1] // hw
    C = C2 // 2

    is_v5, is_v7, vmem_cap = _device_info()
    if elementwise_bf16 is None:
        elementwise_bf16 = not is_v5     # no bf16 VALU/EUP on v5e
    out_bytes = jnp.dtype(out_dtype).itemsize

    # Batch padded to >=8 sublanes (zero rows add 0 to the BN sums; real B is
    # used in 1/(B*hw)), so the MXU M-dim / output stores are not masked.
    Bp = max(8, ((B + 7) // 8) * 8)

    # Per-output-column VMEM cost (double-buffered bf16 weight + output).
    per_col = 2 * (2 * Z * 2) + 2 * Bp * out_bytes
    budget = (vmem_cap * 3) // 8
    max_cols = int(max(128, min(8192, budget // max(per_col, 1))))

    q = 128 // math.gcd(hw, 128)
    if channels_per_tile is not None:
        tc = channels_per_tile
        assert (tc * hw) % 128 == 0, "channel-tile width must be a 128-lane multiple"
        C_pad = ((C + tc - 1) // tc) * tc
    else:
        C_pad = ((C + q - 1) // q) * q
        tc = _pick_channels_per_tile(C_pad, hw, max_cols, prefer_even_tiles=is_v7)
    n_tiles = C_pad // tc
    N = tc * hw

    # ---- host-side operand prep ------------------------------------------
    z_pad = jnp.pad(latent_z.astype(jnp.float32), ((0, Bp - B), (0, 0)))

    # Interleave value/gate halves per channel tile: block j = [value | gate].
    w4 = w_sn_flat.astype(jnp.bfloat16).reshape(Z, 2, C, hw)
    w4 = jnp.pad(w4, ((0, 0), (0, 0), (0, C_pad - C), (0, 0)))
    w_il = (w4.reshape(Z, 2, n_tiles, tc, hw)
              .transpose(0, 2, 1, 3, 4)
              .reshape(Z, n_tiles * 2 * N))

    g_f32 = gamma.astype(jnp.float32)
    b_f32 = beta.astype(jnp.float32)
    ga = jnp.pad(g_f32[:C], (0, C_pad - C), constant_values=1.0)
    ba = jnp.pad(b_f32[:C], (0, C_pad - C))
    gg = jnp.pad(g_f32[C:], (0, C_pad - C), constant_values=1.0)
    bg = jnp.pad(b_f32[C:], (0, C_pad - C))
    gb_tiles = (jnp.stack([ga, ba, gg, bg], axis=0)        # (4, C_pad)
                  .reshape(4, n_tiles, tc).transpose(1, 0, 2))  # (n_tiles, 4, tc)

    # One-hot grouping matrices, built ONCE on the host (fetched once by the
    # pipeliner thanks to the constant index_map below).
    col_ch = np.arange(N) // hw
    G_np = (col_ch[:, None] == np.arange(tc)[None, :]).astype(np.float32)
    G = jnp.asarray(G_np)                                   # (N, tc)
    GT = jnp.asarray(G_np.T)                                # (tc, N)

    # ---- VMEM limit from the actual tile footprint -------------------------
    footprint = (2 * (Z * 2 * N * 2)          # weight tile, dbl-buffered, bf16
                 + 2 * (Bp * N * out_bytes)   # output tile
                 + 2 * (Bp * Z * 4)           # z (constant block)
                 + 2 * (4 * tc * 4)           # gamma/beta tile
                 + 2 * (N * tc * 4)           # G
                 + 2 * (tc * N * 4))          # GT
    vmem_limit = int(min((vmem_cap * 3) // 4, max(32 << 20, footprint * 2)))

    kernel = functools.partial(
        _input_layer_kernel, n_cols=N, inv_n=1.0 / float(B * hw), eps=1e-5,
        elementwise_bf16=bool(elementwise_bf16))

    out_flat = pl.pallas_call(
        kernel,
        out_shape=jax.ShapeDtypeStruct((Bp, C_pad * hw), out_dtype),
        grid=(n_tiles,),
        in_specs=[
            pl.BlockSpec((Bp, Z), lambda j: (0, 0)),         # latent z (constant)
            pl.BlockSpec((Z, 2 * N), lambda j: (0, j)),      # interleaved weights
            pl.BlockSpec((1, 4, tc), lambda j: (j, 0, 0)),   # gamma/beta (packed)
            pl.BlockSpec((N, tc), lambda j: (0, 0)),         # G  (constant)
            pl.BlockSpec((tc, N), lambda j: (0, 0)),         # GT (constant)
        ],
        out_specs=pl.BlockSpec((Bp, N), lambda j: (0, j)),   # lane-dense output
        compiler_params=pltpu.CompilerParams(
            dimension_semantics=("parallel",),               # independent tiles
            vmem_limit_bytes=vmem_limit),
    )(z_pad, w_il, gb_tiles, G, GT)

    out = out_flat[:B].reshape(B, C_pad, H, W)[:, :C]        # drop padding
    return out                                               # NCHW


# --------------------------------------------------------------------------- #
# Spectral norm + pure-JAX reference
# --------------------------------------------------------------------------- #
def spectral_normalize_convT(w, n_iters=30):
    """Spectral normalization matching torch.nn.utils.spectral_norm on a
    ConvTranspose2d weight: PyTorch special-cases ConvTranspose*d to dim=1,
    i.e. sigma is the top singular value of the (out_channels, in*kH*kW) view.
    # TODO(synk): PyTorch keeps a persistent random `u` and runs one power
    # iteration per training step; this converged iteration matches eval use.
    """
    C2 = w.shape[1]
    w_mat = jnp.transpose(w, (1, 0, 2, 3)).reshape(C2, -1)
    u = jnp.ones((C2,), jnp.float32) / jnp.sqrt(float(C2))
    v = None
    for _ in range(n_iters):
        v = w_mat.T @ u
        v = v / (jnp.linalg.norm(v) + 1e-12)
        u = w_mat @ v
        u = u / (jnp.linalg.norm(u) + 1e-12)
    sigma = u @ (w_mat @ v)
    return w / sigma


def reference_forward(latent_z, w_sn_flat_bf16, gamma, beta, *, H=4, W=4):
    """Pure-JAX f32 reference using the same bf16-rounded matmul inputs."""
    B = latent_z.shape[0]
    hw = H * W
    C2 = w_sn_flat_bf16.shape[1] // hw
    z = latent_z.astype(jnp.bfloat16).astype(jnp.float32)
    w = w_sn_flat_bf16.astype(jnp.float32)
    y = jnp.dot(z, w, precision=jax.lax.Precision.HIGHEST)   # (B, C2*hw)
    y = y.reshape(B, C2, H, W)
    mean = y.mean(axis=(0, 2, 3), keepdims=True)
    var = y.var(axis=(0, 2, 3), keepdims=True)                # biased
    y = (y - mean) / jnp.sqrt(var + 1e-5)
    y = y * gamma.reshape(1, C2, 1, 1) + beta.reshape(1, C2, 1, 1)
    a, b = jnp.split(y, 2, axis=1)
    return a * jax.nn.sigmoid(b)


# --------------------------------------------------------------------------- #
# Test
# --------------------------------------------------------------------------- #
if __name__ == "__main__":
    # Small shapes consistent with the module: z_dims=32, out_dims=16, batch=2.
    # NOTE: at these shapes the layer is launch-overhead bound; the wrapper pads
    # batch to 8 sublanes so the MXU M-dim / output stores are not masked, but
    # for real wins batch more samples or fuse with the next upsample block.
    # TODO(synk): BatchNorm running_mean / running_var updates (PyTorch
    # training-mode side effects) are not produced; only the forward output is.
    B, Z, OUT = 2, 32, 16
    C2 = OUT * 2
    H = W = 4
    hw = H * W

    key = jax.random.PRNGKey(0)
    kz, kw, kg, kb = jax.random.split(key, 4)

    latent_z = jax.random.normal(kz, (B, Z), dtype=jnp.float32)

    # ConvTranspose2d weight (in=Z, out=C2, kH=4, kW=4), deterministic init.
    w = jax.random.normal(kw, (Z, C2, H, W), dtype=jnp.float32) * 0.05
    w_sn = spectral_normalize_convT(w)                        # PyTorch dim=1 view
    w_sn_flat_bf16 = w_sn.reshape(Z, C2 * hw).astype(jnp.bfloat16)

    # BatchNorm2d affine params (perturbed from init to exercise the path).
    gamma = 1.0 + 0.1 * jax.random.normal(kg, (C2,), dtype=jnp.float32)
    beta = 0.1 * jax.random.normal(kb, (C2,), dtype=jnp.float32)

    out = input_layer_forward(latent_z, w_sn_flat_bf16, gamma, beta,
                              H=H, W=W, channels_per_tile=8)  # grid=(2,)
    out = jax.block_until_ready(out)

    ref = reference_forward(latent_z, w_sn_flat_bf16, gamma, beta, H=H, W=W)
    assert out.shape == (B, OUT, H, W), out.shape
    out_f32 = out.astype(jnp.float32)
    max_err = float(jnp.max(jnp.abs(out_f32 - ref)))
    # Output / apply-stage are bf16 by default -> bf16-level tolerance.
    assert jnp.allclose(out_f32, ref, rtol=3e-2, atol=3e-2), max_err

    print("KERNEL_OK")
</pallas_src>

<mosaic_0001>
module attributes {stable_mosaic.version = 11 : i64} {
  func.func @_input_layer_kernel(%arg0: i32, %arg1: memref<8x32xf32, #tpu.memory_space<vmem>>, %arg2: memref<32x256xbf16, #tpu.memory_space<vmem>>, %arg3: memref<1x4x8xf32, #tpu.memory_space<vmem>>, %arg4: memref<128x8xf32, #tpu.memory_space<vmem>>, %arg5: memref<8x128xf32, #tpu.memory_space<vmem>>, %arg6: memref<8x128xbf16, #tpu.memory_space<vmem>>) attributes {dimension_semantics = [#tpu.dimension_semantics<parallel>], iteration_bounds = array<i64: 2>, scalar_prefetch = 0 : i64, scratch_operands = 0 : i64, tpu.core_type = #tpu.core_type<tc>, window_params = [{pipeline_mode = #tpu.pipeline_mode<synchronous>, transform_indices = @transform_0, window_bounds = array<i64: 8, 32>}, {transform_indices = @transform_1, window_bounds = array<i64: 32, 256>}, {transform_indices = @transform_2, window_bounds = array<i64: 1, 4, 8>}, {pipeline_mode = #tpu.pipeline_mode<synchronous>, transform_indices = @transform_3, window_bounds = array<i64: 128, 8>}, {pipeline_mode = #tpu.pipeline_mode<synchronous>, transform_indices = @transform_4, window_bounds = array<i64: 8, 128>}, {transform_indices = @transform_5, window_bounds = array<i64: 8, 128>}]} {
    %c0 = arith.constant 0 : index
    %c0_0 = arith.constant 0 : index
    %0 = vector.load %arg1[%c0, %c0_0] : memref<8x32xf32, #tpu.memory_space<vmem>>, vector<8x32xf32>
    %1 = arith.truncf %0 : vector<8x32xf32> to vector<8x32xbf16>
    %c0_1 = arith.constant 0 : index
    %c0_2 = arith.constant 0 : index
    %2 = vector.load %arg2[%c0_1, %c0_2] : memref<32x256xbf16, #tpu.memory_space<vmem>>, vector<32x256xbf16>
    %cst = arith.constant dense<0.000000e+00> : vector<8x256xf32>
    %3 = tpu.matmul %1, %2, %cst {dimension_numbers = #tpu.dot_dimension_numbers<[1], [0], [0], [1], [0, 0, 1, 1], [], []>} : vector<8x32xbf16>, vector<32x256xbf16>, vector<8x256xf32> -> vector<8x256xf32>
    %4 = vector.extract_strided_slice %3 {offsets = [0, 0], sizes = [8, 128], strides = [1, 1]} : vector<8x256xf32> to vector<8x128xf32>
    %5 = vector.extract_strided_slice %3 {offsets = [0, 128], sizes = [8, 128], strides = [1, 1]} : vector<8x256xf32> to vector<8x128xf32>
    %cst_3 = arith.constant dense<0.000000e+00> : vector<128xf32>
    %6 = vector.multi_reduction <add>, %4, %cst_3 [0] : vector<8x128xf32> to vector<128xf32>
    %7 = vector.shape_cast %6 : vector<128xf32> to vector<1x128xf32>
    %8 = arith.mulf %4, %4 : vector<8x128xf32>
    %cst_4 = arith.constant dense<0.000000e+00> : vector<128xf32>
    %9 = vector.multi_reduction <add>, %8, %cst_4 [0] : vector<8x128xf32> to vector<128xf32>
    %10 = vector.shape_cast %9 : vector<128xf32> to vector<1x128xf32>
    %cst_5 = arith.constant dense<0.000000e+00> : vector<128xf32>
    %11 = vector.multi_reduction <add>, %5, %cst_5 [0] : vector<8x128xf32> to vector<128xf32>
    %12 = vector.shape_cast %11 : vector<128xf32> to vector<1x128xf32>
    %13 = arith.mulf %5, %5 : vector<8x128xf32>
    %cst_6 = arith.constant dense<0.000000e+00> : vector<128xf32>
    %14 = vector.multi_reduction <add>, %13, %cst_6 [0] : vector<8x128xf32> to vector<128xf32>
    %15 = vector.shape_cast %14 : vector<128xf32> to vector<1x128xf32>
    %16 = tpu.concatenate %7, %10, %12, %15 in 0 : vector<1x128xf32>, vector<1x128xf32>, vector<1x128xf32>, vector<1x128xf32> -> vector<4x128xf32>
    %c0_7 = arith.constant 0 : index
    %c0_8 = arith.constant 0 : index
    %17 = vector.load %arg4[%c0_7, %c0_8] : memref<128x8xf32, #tpu.memory_space<vmem>>, vector<128x8xf32>
    %cst_9 = arith.constant dense<0.000000e+00> : vector<4x8xf32>
    %18 = tpu.matmul %16, %17, %cst_9 {dimension_numbers = #tpu.dot_dimension_numbers<[1], [0], [0], [1], [0, 0, 1, 1], [], []>} : vector<4x128xf32>, vector<128x8xf32>, vector<4x8xf32> -> vector<4x8xf32>
    %cst_10 = arith.constant 3.125000e-02 : f32
    %19 = vector.broadcast %cst_10 : f32 to vector<4x8xf32>
    %20 = arith.mulf %18, %19 : vector<4x8xf32>
    %21 = vector.extract_strided_slice %20 {offsets = [0, 0], sizes = [1, 8], strides = [1, 1]} : vector<4x8xf32> to vector<1x8xf32>
    %22 = vector.extract_strided_slice %20 {offsets = [1, 0], sizes = [1, 8], strides = [1, 1]} : vector<4x8xf32> to vector<1x8xf32>
    %23 = vector.extract_strided_slice %20 {offsets = [2, 0], sizes = [1, 8], strides = [1, 1]} : vector<4x8xf32> to vector<1x8xf32>
    %24 = vector.extract_strided_slice %20 {offsets = [3, 0], sizes = [1, 8], strides = [1, 1]} : vector<4x8xf32> to vector<1x8xf32>
    %25 = arith.mulf %21, %21 : vector<1x8xf32>
    %26 = arith.subf %22, %25 : vector<1x8xf32>
    %27 = arith.mulf %23, %23 : vector<1x8xf32>
    %28 = arith.subf %24, %27 : vector<1x8xf32>
    %c0_11 = arith.constant 0 : index
    %c0_12 = arith.constant 0 : index
    %c0_13 = arith.constant 0 : index
    %29 = vector.load %arg3[%c0_11, %c0_12, %c0_13] : memref<1x4x8xf32, #tpu.memory_space<vmem>>, vector<1x4x8xf32>
    %30 = vector.extract_strided_slice %29 {offsets = [0, 0, 0], sizes = [1, 1, 8], strides = [1, 1, 1]} : vector<1x4x8xf32> to vector<1x1x8xf32>
    %31 = vector.shape_cast %30 : vector<1x1x8xf32> to vector<1x8xf32>
    %32 = vector.extract_strided_slice %29 {offsets = [0, 1, 0], sizes = [1, 1, 8], strides = [1, 1, 1]} : vector<1x4x8xf32> to vector<1x1x8xf32>
    %33 = vector.shape_cast %32 : vector<1x1x8xf32> to vector<1x8xf32>
    %34 = vector.extract_strided_slice %29 {offsets = [0, 2, 0], sizes = [1, 1, 8], strides = [1, 1, 1]} : vector<1x4x8xf32> to vector<1x1x8xf32>
    %35 = vector.shape_cast %34 : vector<1x1x8xf32> to vector<1x8xf32>
    %36 = vector.extract_strided_slice %29 {offsets = [0, 3, 0], sizes = [1, 1, 8], strides = [1, 1, 1]} : vector<1x4x8xf32> to vector<1x1x8xf32>
    %37 = vector.shape_cast %36 : vector<1x1x8xf32> to vector<1x8xf32>
    %cst_14 = arith.constant 9.99999974E-6 : f32
    %38 = vector.broadcast %cst_14 : f32 to vector<1x8xf32>
    %39 = arith.addf %26, %38 : vector<1x8xf32>
    %40 = math.rsqrt %39 : vector<1x8xf32>
    %41 = arith.mulf %31, %40 : vector<1x8xf32>
    %42 = arith.mulf %21, %41 : vector<1x8xf32>
    %43 = arith.subf %33, %42 : vector<1x8xf32>
    %cst_15 = arith.constant 9.99999974E-6 : f32
    %44 = vector.broadcast %cst_15 : f32 to vector<1x8xf32>
    %45 = arith.addf %28, %44 : vector<1x8xf32>
    %46 = math.rsqrt %45 : vector<1x8xf32>
    %47 = arith.mulf %35, %46 : vector<1x8xf32>
    %48 = arith.mulf %23, %47 : vector<1x8xf32>
    %49 = arith.subf %37, %48 : vector<1x8xf32>
    %50 = tpu.concatenate %41, %43, %47, %49 in 0 : vector<1x8xf32>, vector<1x8xf32>, vector<1x8xf32>, vector<1x8xf32> -> vector<4x8xf32>
    %c0_16 = arith.constant 0 : index
    %c0_17 = arith.constant 0 : index
    %51 = vector.load %arg5[%c0_16, %c0_17] : memref<8x128xf32, #tpu.memory_space<vmem>>, vector<8x128xf32>
    %cst_18 = arith.constant dense<0.000000e+00> : vector<4x128xf32>
    %52 = tpu.matmul %50, %51, %cst_18 {dimension_numbers = #tpu.dot_dimension_numbers<[1], [0], [0], [1], [0, 0, 1, 1], [], []>} : vector<4x8xf32>, vector<8x128xf32>, vector<4x128xf32> -> vector<4x128xf32>
    %53 = arith.truncf %4 : vector<8x128xf32> to vector<8x128xbf16>
    %54 = arith.truncf %5 : vector<8x128xf32> to vector<8x128xbf16>
    %55 = arith.truncf %52 : vector<4x128xf32> to vector<4x128xbf16>
    %56 = vector.extract_strided_slice %55 {offsets = [0, 0], sizes = [1, 128], strides = [1, 1]} : vector<4x128xbf16> to vector<1x128xbf16>
    %57 = vector.broadcast %56 : vector<1x128xbf16> to vector<8x128xbf16>
    %58 = arith.mulf %53, %57 : vector<8x128xbf16>
    %59 = vector.extract_strided_slice %55 {offsets = [1, 0], sizes = [1, 128], strides = [1, 1]} : vector<4x128xbf16> to vector<1x128xbf16>
    %60 = vector.broadcast %59 : vector<1x128xbf16> to vector<8x128xbf16>
    %61 = arith.addf %58, %60 : vector<8x128xbf16>
    %62 = vector.extract_strided_slice %55 {offsets = [2, 0], sizes = [1, 128], strides = [1, 1]} : vector<4x128xbf16> to vector<1x128xbf16>
    %63 = vector.broadcast %62 : vector<1x128xbf16> to vector<8x128xbf16>
    %64 = arith.mulf %54, %63 : vector<8x128xbf16>
    %65 = vector.extract_strided_slice %55 {offsets = [3, 0], sizes = [1, 128], strides = [1, 1]} : vector<4x128xbf16> to vector<1x128xbf16>
    %66 = vector.broadcast %65 : vector<1x128xbf16> to vector<8x128xbf16>
    %67 = arith.addf %64, %66 : vector<8x128xbf16>
    %68 = arith.negf %67 : vector<8x128xbf16>
    %69 = math.exp %68 : vector<8x128xbf16>
    %cst_19 = arith.constant 1.000000e+00 : bf16
    %70 = vector.broadcast %cst_19 : bf16 to vector<8x128xbf16>
    %71 = arith.addf %70, %69 : vector<8x128xbf16>
    %72 = arith.divf %70, %71 : vector<8x128xbf16>
    %73 = arith.mulf %61, %72 : vector<8x128xbf16>
    %c0_20 = arith.constant 0 : index
    %c0_21 = arith.constant 0 : index
    %74 = vector.load %arg6[%c0_20, %c0_21] : memref<8x128xbf16, #tpu.memory_space<vmem>>, vector<8x128xbf16>
    tpu.vector_store %arg6[%c0_20, %c0_21], %73 {strides = array<i32>} : memref<8x128xbf16, #tpu.memory_space<vmem>>, vector<8x128xbf16>,
    return
  }
  func.func @transform_0(%arg0: i32) -> (i32, i32) {
    %c0_i32 = arith.constant 0 : i32
    %c0_i32_0 = arith.constant 0 : i32
    %c0_i32_1 = arith.constant 0 : i32
    return %c0_i32, %c0_i32_0 : i32, i32
  }
  func.func @transform_1(%arg0: i32) -> (i32, i32) {
    %c0_i32 = arith.constant 0 : i32
    %c0_i32_0 = arith.constant 0 : i32
    return %c0_i32, %arg0 : i32, i32
  }
  func.func @transform_2(%arg0: i32) -> (i32, i32, i32) {
    %c0_i32 = arith.constant 0 : i32
    %c0_i32_0 = arith.constant 0 : i32
    %c0_i32_1 = arith.constant 0 : i32
    return %arg0, %c0_i32, %c0_i32_0 : i32, i32, i32
  }
  func.func @transform_3(%arg0: i32) -> (i32, i32) {
    %c0_i32 = arith.constant 0 : i32
    %c0_i32_0 = arith.constant 0 : i32
    %c0_i32_1 = arith.constant 0 : i32
    return %c0_i32, %c0_i32_0 : i32, i32
  }
  func.func @transform_4(%arg0: i32) -> (i32, i32) {
    %c0_i32 = arith.constant 0 : i32
    %c0_i32_0 = arith.constant 0 : i32
    %c0_i32_1 = arith.constant 0 : i32
    return %c0_i32, %c0_i32_0 : i32, i32
  }
  func.func @transform_5(%arg0: i32) -> (i32, i32) {
    %c0_i32 = arith.constant 0 : i32
    %c0_i32_0 = arith.constant 0 : i32
    return %c0_i32, %arg0 : i32, i32
  }
}

</mosaic_0001>

<bundles_post_ra>
// kernel: tpu_custom_call.1
= control target key start
LH: loop header
LB: loop body
LE: loop exit
PB: predicated region body
PF: predicated region fallthrough
CT: control target
= control target key end

     0   :  { %10 = vsyncpa [#allocation4], 0  ;;  %s1154_s0 = inlined_call_operand.vmem [shape: f32[8,32], index: 0, kind: input, shape index: {}]   ;;  %s1155_s1 = inlined_call_operand.vmem [shape: bf16[32,512], index: 1, kind: input, shape index: {}]   ;;  %s1156_s2 = inlined_call_operand.vmem [shape: f32[2,4,8], index: 2, kind: input, shape index: {}]   ;;  %s1157_s3 = inlined_call_operand.vmem [shape: f32[128,8], index: 3, kind: input, shape index: {}]   ;;  %s1158_s4 = inlined_call_operand.vmem [shape: f32[8,128], index: 4, kind: input, shape index: {}]   ;;  %s1159_s5 = inlined_call_operand.hbm [shape: bf16[8,256], index: 5, kind: output, shape index: {}]  }
   0x1   :  { %12 = vsyncpa [#allocation4 + $0x1], 0  ;;  %s963_s18 = smov 0   ;;  %s965_s19 = smov 0  }
   0x2   :  { %s967_s20 = smov 0   ;;  %s969_s21 = smov 0  }
   0x3 LB: > { %s984_s22 = sadd.s32 4294967295, %s926_s21   ;;  %s704_s23 = sadd.s32 4294967294, %s926_s21   ;;  %s926_s21 = sphi %s969_s21, %s1165_s21   ;;  %s922_s20 = sphi %s967_s20, %s1164_s20   ;;  %s918_s19 = sphi %s965_s19, %s1163_s19   ;;  %s914_s18 = sphi %s963_s18, %s1162_s18  }
   0x4   : > { %s988_s24 = sadd.s32 1, %s926_s21   ;;  %s46_s25 = sadd.s32 1, %s922_s20 }
   0x5   : > { %s43_s26 = ssub.s32 %s926_s21, %s988_s24  ;;  %p53_p0 = scmp.ne.s32.totalorder %s922_s20, %s918_s19 }
   0x6   : > { %p44_p1 = scmp.eq.s32.totalorder %s43_s26, 0  ;;  %p54_p2 = scmp.eq.s32.totalorder %s926_s21, 0 }
   0x7   : > { %p151_p3 = scmp.eq.s32.totalorder %s984_s22, 1  ;;  %p156_p4 = scmp.ne.s32.totalorder %s918_s19, %s914_s18 }
   0x8   : > { %s1000_s27 = scalar_select %p44_p1, %s922_s20, %s46_s25  }
   0x9   : > { %p55_p5 = por %p54_p2, %p53_p0  ;;  %p1002_p6 = por %p151_p3, %p53_p0 }
   0xa   : > { %p157_p7 = scmp.eq.s32.totalorder %s704_s23, 1  ;;  %p706_p9 = scmp.ge.s32.totalorder %s926_s21, 2 }
   0xc   : > { %p1006_p8 = por %p157_p7, %p156_p4  ;;  %182 = sbr.rel (%p706_p9) target bundleno = 26 (0x1a), region = 28 }
  0x13   : > { %185 = sbr.rel (!%p55_p5) target bundleno = 26 (0x1a), region = 32  ;;  %s187_s30 = sand.u32 (%p55_p5), 1, %s922_s20  }
  0x14   : > { %s725_s6 = sshll.u32 (%p55_p5), %s926_s21, 3  ;;  %s707_s7 = sshll.u32 (%p55_p5), %s187_s30, 5 }
  0x15   : > { %s192_s10 = scalar_lea.vmem (%p55_p5), %s1155_s1, %s725_s6  ;;  %s189_s11 = scalar_lea.vmem (%p55_p5), [#allocation2], %s707_s7 }
  0x16   : > { %v226_v0 = vld [vmem:[%s192_s10] sm:$0xff] (%p55_p5)  ;;  %v228_v1 = vld [vmem:[%s192_s10 + $0x10] sm:$0xff] (%p55_p5) }
  0x17   : > { %v230_v2 = vld [vmem:[%s192_s10 + $0x20] sm:$0xff] (%p55_p5)  ;;  %227 = vst [vmem:[%s189_s11] sm:$0xff] (%p55_p5), %v226_v0  ;;  %229 = vst [vmem:[%s189_s11 + $0x8] sm:$0xff] (%p55_p5), %v228_v1  ;;  %v232_v3 = vld [vmem:[%s192_s10 + $0x30] sm:$0xff] (%p55_p5) }
  0x18   : > { %231 = vst [vmem:[%s189_s11 + $0x10] sm:$0xff] (%p55_p5), %v230_v2  ;;  %233 = vst [vmem:[%s189_s11 + $0x18] sm:$0xff] (%p55_p5), %v232_v3 }
  0x1a PF: > { %p710_p10 = scmp.ge.s32.totalorder %s926_s21, 1  ;;  %p245_p11 = scmp.lt.s32.totalorder %s926_s21, 3 }
  0x1c   : > { %p246_p12 = pnand %p710_p10, %p245_p11 }
  0x1d   : > { %s1021_s12 = sand.u32 (!%p246_p12), 1, %s918_s19   ;;  %v393_v4 = vld [vmem:[%s1157_s3] sm:$0xff] (!%p246_p12)  ;;  %v928_v5 = vmov (!%p246_p12), 0   ;;  %v929_v6 = vmov (!%p246_p12), 0.0|0.0   ;;  %v394_v7 = vld [vmem:[%s1157_s3 + $0x8] sm:$0xff] (!%p246_p12)  ;;  %v395_v8 = vld [vmem:[%s1157_s3 + $0x10] sm:$0xff] (!%p246_p12) }
  0x1e   : > { %249 = sbr.rel (%p246_p12) target bundleno = 784 (0x310), region = 74  ;;  %s711_s15 = sshll.u32 (!%p246_p12), %s1021_s12, 5  ;;  %352 = vmatprep.mubr.bf16.mxu0 (!%p246_p12), %v928_v5  ;;  %785 = vmatprep.subr.bf16.mxu1 (!%p246_p12), %v929_v6  ;;  %v396_v9 = vld [vmem:[%s1157_s3 + $0x18] sm:$0xff] (!%p246_p12)  ;;  %v786_v10 = vpack.c.bf16 (!%p246_p12), %v394_v7, %v393_v4  ;;  %v397_v15 = vld [vmem:[%s1157_s3 + $0x20] sm:$0xff] (!%p246_p12)  ;;  %v398_v16 = vld [vmem:[%s1157_s3 + $0x28] sm:$0xff] (!%p246_p12)  ;;  %vm316_vm0 = vcmask (!%p246_p12), 261120  }
  0x1f   : > { %s254_s6 = scalar_lea.vmem (!%p246_p12), [#allocation2], %s711_s15  ;;  %v789_v13 = vpack.c.bf16 (!%p246_p12), %v396_v9, %v395_v8  ;;  %v290_v18 = vld [vmem:[%s1154_s0] sm:$0xff] (!%p246_p12)  ;;  %v792_v19 = vpack.c.bf16 (!%p246_p12), %v398_v16, %v397_v15  ;;  %v399_v21 = vld [vmem:[%s1157_s3 + $0x30] sm:$0xff] (!%p246_p12)  ;;  %v400_v22 = vld [vmem:[%s1157_s3 + $0x38] sm:$0xff] (!%p246_p12)  ;;  %vm930_vm1 = vmmov (!%p246_p12), 0   ;;  %v931_v36 = vmov (!%p246_p12), 0.0  }
  0x20   : > { %v852_v11 = vld [vmem:[%s254_s6 + $0x4] ss:$8 sps:$4 sm:$0xff] (!%p246_p12)   ;;  %v854_v12 = vld [vmem:[%s254_s6] ss:$8 sps:$4 sm:$0xff] (!%p246_p12)   ;;  %787 = vmatpush3.bf16.msra.mxu1 (!%p246_p12), %v786_v10  ;;  %v855_v14 = vld [vmem:[%s254_s6 + $0x14] ss:$8 sps:$4 sm:$0xff] (!%p246_p12)   ;;  %v291_v20 = vpack.c.bf16 (!%p246_p12), %v290_v18, %v290_v18  ;;  %v795_v23 = vpack.c.bf16 (!%p246_p12), %v400_v22, %v399_v21  ;;  %777 = vmatprep.mubr.msk.f32.mxu1 (!%p246_p12), %vm930_vm1, %v931_v36 }
  0x21   : > { %320 = vmatprep.subr.bf16.mxu0 (!%p246_p12), %v852_v11  ;;  %788 = vmatprep.subr.bf16.mxu1 (!%p246_p12), %v929_v6  ;;  %v857_v17 = vld [vmem:[%s254_s6 + $0x10] ss:$8 sps:$4 sm:$0xff] (!%p246_p12)   ;;  %v401_v24 = vld [vmem:[%s1157_s3 + $0x40] sm:$0xff] (!%p246_p12)  ;;  %v402_v25 = vld [vmem:[%s1157_s3 + $0x48] sm:$0xff] (!%p246_p12)  ;;  %vm387_vm2 = vcmask (!%p246_p12), 1040384   ;;  %vm389_vm3 = vcmask (!%p246_p12), 1041408  }
  0x22   : > { %321 = vmatpush1.bf16.msra.mxu0 (!%p246_p12), %v854_v12  ;;  %v798_v26 = vpack.c.bf16 (!%p246_p12), %v402_v25, %v401_v24  ;;  %v403_v27 = vld [vmem:[%s1157_s3 + $0x50] sm:$0xff] (!%p246_p12)  ;;  %v404_v28 = vld [vmem:[%s1157_s3 + $0x58] sm:$0xff] (!%p246_p12)  ;;  %v405_v30 = vld [vmem:[%s1157_s3 + $0x60] sm:$0xff] (!%p246_p12)  ;;  %vm391_vm4 = vcmask (!%p246_p12), 1042432   ;;  %p284_p13 = scmp.lt.s32.totalorder (!%p246_p12), %s984_s22, 1  ;;  %vm501_vm5 = vcmask (!%p246_p12), 64512   ;;  %v581_v24 = vlaneseq (!%p246_p12) }
  0x23   : > { %322 = vmatprep.subr.bf16.mxu0 (!%p246_p12), %v855_v14  ;;  %v801_v29 = vpack.c.bf16 (!%p246_p12), %v404_v28, %v403_v27  ;;  %v406_v31 = vld [vmem:[%s1157_s3 + $0x68] sm:$0xff] (!%p246_p12)  ;;  %v407_v33 = vld [vmem:[%s1157_s3 + $0x70] sm:$0xff] (!%p246_p12)  ;;  %v408_v34 = vld [vmem:[%s1157_s3 + $0x78] sm:$0xff] (!%p246_p12)  ;;  %s712_s10 = sshll.u32 (!%p246_p12), %s1021_s12, 2  ;;  %s722_s11 = sshll.u32 (!%p246_p12), %s984_s22, 6 }
  0x24   : > { %790 = vmatpush3.bf16.msra.mxu1 (!%p246_p12), %v789_v13  ;;  %v804_v32 = vpack.c.bf16 (!%p246_p12), %v406_v31, %v405_v30  ;;  %v807_v35 = vpack.c.bf16 (!%p246_p12), %v408_v34, %v407_v33  ;;  %v582_v25 = vshrl.u32 (!%p246_p12), %v581_v24, 7  ;;  %s282_s13 = scalar_lea.vmem (!%p246_p12), [#allocation3], %s712_s10  ;;  %s1110_s17 = scalar_lea.hbm (!%p246_p12), %s1159_s5, %s722_s11 }
  0x25   : > { %791 = vmatprep.subr.bf16.mxu1 %v929_v6  ;;  %s285_s30 = scalar_select %p284_p13, %s984_s22, 1 }
  0x26   : > { %323 = vmatpush1.bf16.msra.mxu0 %v857_v17  ;;  %v583_v28 = vsub.s32 0, %v582_v25  ;;  %s627_s14 = sshll.u32 %s282_s13, 4  ;;  %s614_s23 = scalar_lea.sflag [#allocation4], %s1021_s12  ;;  %s1112_s14 = int_to_ptr.vmem [resolvable:$true] %s627_s14 }
  0x27   : > { %780 = vmatprep.subr.mxu0 %v931_v36  ;;  %s713_s6 = sshll.u32 %s285_s30, 2  ;;  %s864_s25 = scalar_lea.vmem %s1112_s14, 64 }
  0x28   : > { %793 = vmatpush3.bf16.msra.mxu1 %v792_v19  ;;  %s287_s9 = scalar_lea.vmem %s1156_s2, %s713_s6  ;;  %p865_p0 = scmp.ne.s32.totalorder %s1112_s14, %s864_s25 }
  0x29   : > { %718 = vmatmul.mubr.msk.bf16.vlgmr.msra.gmra.mrb[0].mxu0 %vm316_vm0, %v291_v20  ;;  %794 = vmatprep.subr.bf16.mxu1 %v929_v6  ;;  %v485_v15 = vld [vmem:[%s287_s9] sm:$0xf]  ;;  %s932_s22 = smov [#allocation3]  }
  0x2a   : > { %782 = vmatprep.mubr.msk.f32.mxu0 %vm930_vm1, %v931_v36  ;;  %p866_p1 = pnand %p865_p0, %p1002_p6  ;;  %s868_s26 = sshll.u32 %s932_s22, 4  ;;  %s869_s26 = int_to_ptr.vmem [resolvable:$false] %s868_s26 }
  0x2b   : > { %s870_s30 = scalar_lea.vmem %s869_s26, 128  ;;  %p871_p3 = scmp.lt.s32.totalorder %s1112_s14, %s869_s26 }
  0x2c   : > { %796 = vmatpush3.bf16.msra.mxu1 %v795_v23  ;;  %p867_p2 = pneg %p866_p1  ;;  %p872_p4 = scmp.lt.s32.totalorder %s870_s30, %s864_s25 }
  0x2d   : > { %797 = vmatprep.subr.bf16.mxu1 %v929_v6 }
  0x2e   : > { %p873_p5 = por %p872_p4, %p871_p3 }
  0x30   : > { %799 = vmatpush3.bf16.msra.mxu1 %v798_v26  ;;  %p874_p7 = pnand %p873_p5, %p867_p2 }
  0x31   : > { %800 = vmatprep.subr.bf16.mxu1 %v929_v6 }
  0x34   : > { %802 = vmatpush3.bf16.msra.mxu1 %v801_v29  ;;  %v596_v29 = vsub.s32 1, %v582_v25 }
  0x35   : > { %803 = vmatprep.subr.bf16.mxu1 %v929_v6 }
  0x38   : > { %805 = vmatpush3.bf16.msra.mxu1 %v804_v32 }
  0x39   : > { %806 = vmatprep.subr.bf16.mxu1 %v929_v6  ;;  %v500_v6 = vld [vmem:[%s1158_s4] sm:$0xff] }
  0x3a   : > { %781 = vmatpush3.msra.mxu0 %v500_v6 }
  0x3c   : > { %808 = vmatpush3.bf16.msra.mxu1 %v807_v35 }
  0xfc   : > { %v1075_v37 = vpop.f32.mrb[0].mxu0 }
  0xfd   : > { %v361_v38 = vrot.slane %v1075_v37, 4  ;;  %v367_v39 = vmul.f32 %v1075_v37, %v1075_v37  ;;  %v1080_v40 = vpop.f32.mrb[1].mxu0  ;;  %v575_v33 = vpack.c.bf16 %v1075_v37, %v1075_v37 }
  0xfe   : > { %v374_v41 = vrot.slane %v1080_v40, 4  ;;  %v380_v42 = vmul.f32 %v1080_v40, %v1080_v40  ;;  %v358_v43 = vpop.f32.mrb[2].mxu0  ;;  %v576_v34 = vpack.c.bf16 %v1080_v40, %v1080_v40 }
  0xff   : > { %v362_v44 = vadd.f32 %v361_v38, %v1075_v37  ;;  %v368_v45 = vrot.slane %v367_v39, 4  ;;  %v359_v46 = vpop.f32.mrb[3].mxu0 }
 0x100   : > { %v375_v47 = vadd.f32 %v374_v41, %v1080_v40  ;;  %v381_v48 = vrot.slane %v380_v42, 4 }
 0x101   : > { %v363_v49 = vrot.slane %v362_v44, 2  ;;  %v369_v50 = vadd.f32 %v368_v45, %v367_v39 }
 0x102   : > { %v376_v51 = vrot.slane %v375_v47, 2  ;;  %v382_v52 = vadd.f32 %v381_v48, %v380_v42 }
 0x103   : > { %v364_v53 = vadd.f32 %v363_v49, %v362_v44  ;;  %v370_v54 = vrot.slane %v369_v50, 2 }
 0x104   : > { %v377_v55 = vadd.f32 %v376_v51, %v375_v47  ;;  %v383_v56 = vrot.slane %v382_v52, 2 }
 0x105   : > { %v365_v57 = vrot.slane %v364_v53, 1  ;;  %v371_v58 = vadd.f32 %v370_v54, %v369_v50 }
 0x106   : > { %v378_v59 = vrot.slane %v377_v55, 1  ;;  %v384_v60 = vadd.f32 %v383_v56, %v382_v52 }
 0x107   : > { %v372_v61 = vrot.slane %v371_v58, 1  ;;  %v366_v63 = vadd.f32 %v365_v57, %v364_v53 }
 0x108   : > { %v385_v62 = vrot.slane %v384_v60, 1  ;;  %v379_v1 = vadd.f32 %v378_v59, %v377_v55 }
 0x109   : > { %v373_v0 = vadd.f32 %v372_v61, %v371_v58 }
 0x10a   : > { %v386_v2 = vadd.f32 %v385_v62, %v384_v60 }
 0x10b   : > { %v388_v3 = vsel %vm387_vm2, %v366_v63, %v373_v0 }
 0x10c   : > { %v390_v4 = vsel %vm389_vm3, %v388_v3, %v379_v1 }
 0x10d   : > { %v392_v5 = vsel %vm391_vm4, %v390_v4, %v386_v2 }
 0x10e   : > { %778 = vmatmul.mubr.f32.vlgmr.msra.gmra.mrb[0].mxu1 %v392_v5 }
 0x1e1   : > { %v475_v7 = vpop.f32.mrb[0].mxu1 }
 0x1e2   : > { %v479_v8 = vmul.f32 0.03125, %v475_v7  ;;  %v779_v9 = vpop.f32.mrb[1].mxu1 }
 0x1e4   : > { %v480_v10 = vmul.f32 %v479_v8, %v479_v8 }
 0x1e6   : > { %v482_v11 = vrot.slane %v480_v10, 7 }
 0x1e8   : > { %v484_v12 = vsub.f32 %v479_v8, %v482_v11 }
 0x1ea   : > { %v486_v13 = vadd.f32 1e-05, %v484_v12 }
 0x1ec   : > { %858 = vrsqrt.f32 %v486_v13 }
 0x1f6   : > { %v859_v14 = vpop.eup %858 }
 0x1f7   : > { %v489_v16 = vrot.slane %v859_v14, 1 }
 0x1f9   : > { %v491_v17 = vmul.f32 %v489_v16, %v485_v15 }
 0x1fb   : > { %v492_v18 = vmul.f32 %v491_v17, %v479_v8 }
 0x1fd   : > { %v494_v19 = vrot.slane %v492_v18, 7 }
 0x1ff   : > { %v496_v20 = vsub.f32 %v485_v15, %v494_v19 }
 0x201   : > { %v497_v21 = vsel %vm387_vm2, %v491_v17, %v496_v20 }
 0x202   : > { %v498_v22 = vsel %vm389_vm3, %v497_v21, %v491_v17 }
 0x203   : > { %v499_v23 = vsel %vm391_vm4, %v498_v22, %v496_v20 }
 0x204   : > { %783 = vmatmul.mubr.msk.f32.vlgmr.msra.gmra.mrb[4].mxu0 %vm501_vm5, %v499_v23 }
 0x2d7   : > { %v571_v26 = vpop.f32.mrb[4].mxu0 }
 0x2d8   : > { %v577_v27 = vpack.c.bf16 %v571_v26, %v571_v26  ;;  %v784_v30 = vpop.f32.mrb[5].mxu0 }
 0x2da   : > { %v579_v31 = vpack.i.b16 %v577_v27, %v577_v27  ;;  %v586_v32 = vshrl.u32 %v577_v27, 16 }
 0x2dc   : > { %v584_v35 = vrot.slane %v579_v31, %v583_v28  ;;  %v587_v36 = vpack.i.b16 %v586_v32, %v586_v32  ;;  %v597_v38 = vrot.slane %v579_v31, %v596_v29 }
 0x2de   : > { %v585_v39 = vmul.bf16 %v584_v35, %v575_v33  ;;  %v592_v41 = vrot.slane %v587_v36, %v583_v28  ;;  %v598_v42 = vmul.bf16 %v597_v38, %v576_v34  ;;  %v602_v43 = vrot.slane %v587_v36, %v596_v29 }
 0x2e0   : > { %v593_v44 = vadd.bf16 %v592_v41, %v585_v39  ;;  %v603_v45 = vadd.bf16 %v602_v43, %v598_v42 }
 0x2e2   : > { %v720_v46 = vmul.bf16 3216621497, %v603_v45 }
 0x2e4   : > { %860 = vpow.bf16 %v720_v46 }
 0x2ef   : > { %v861_v47 = vpop.eup %860 }
 0x2f0   : > { %v608_v37 = vadd.bf16 1065369472, %v861_v47 }
 0x2f2   : > { %862 = vrcp.bf16 %v608_v37 }
 0x2fd   : > { %v863_v48 = vpop.eup %862 }
 0x2fe   : > { %v610_v40 = vmul.bf16 1065369472, %v863_v48 }
 0x300   : > { %v611_v49 = vmul.bf16 %v610_v40, %v593_v44 }
 0x302   : > { %612 = vst [vmem:[%s282_s13] sm:$0xf] %v611_v49 }
 0x303   : > { %877 = shalt.err (!%p874_p7)
}
 0x304   : > { %s878_s12 = scalar_lea.hbm %s1110_s17, 64  ;;  %s882_s8 = scalar_lea.hbm %s1159_s5, 128 }
 0x305   : > { %p879_p10 = scmp.ne.s32.totalorder %s1110_s17, %s878_s12  ;;  %p883_p13 = scmp.lt.u32.totalorder %s1110_s17, %s1159_s5 }
 0x306   : > { %p884_p0 = scmp.lt.u32.totalorder %s882_s8, %s878_s12  ;;  %p886_p2 = scmp.lt.u32.totalorder %s878_s12, %s1110_s17 }
 0x307   : > { %p880_p11 = pnand %p879_p10, %p1002_p6 }
 0x308   : > { %p885_p1 = por %p884_p0, %p883_p13 }
 0x309   : > { %p881_p12 = pneg %p880_p11 }
 0x30a   : > { %p887_p3 = por %p886_p2, %p885_p1 }
 0x30c   : > { %p888_p4 = pnand %p887_p3, %p881_p12 }
 0x30e   : > { %891 = shalt.err (!%p888_p4)
}
 0x30f   : > { %809 = dma.vmem_to_hbm [thread:$0]  (%p1002_p6), %s1112_s14, 64, %s1110_s17, %s614_s23  }
 0x310 PF: > { %s639_s11 = sand.u32 1, %s914_s18   ;;  %p812_p5 = pnand %p706_p9, %p1006_p8 }
 0x311   : > { %s640_s13 = scalar_lea.sflag [#allocation4], %s639_s11 }
 0x312   : > { %909 = dma.done.wait (!%p812_p5), %s640_s13, 64  }
 0x313   : > { %911 = vsyncadd (!%p812_p5), %s640_s13, 4294967232  ;;  %p15_p7 = scmp.ge.s32.totalorder %s988_s24, 4   ;;  %s1162_s18 = smov %s918_s19 }
 0x314   : > { %s1163_s19 = smov %s922_s20  ;;  %s1164_s20 = smov %s1000_s27 }
 0x315   : > { %s1165_s21 = smov %s988_s24  ;;  %17 = sbr.rel (!%p15_p7) target bundleno = 3 (0x3), region = 121 }
 0x31c   :  { %645 = vsyncpa [#allocation4], 1 }
 0x31d   :  { %647 = vsyncpa [#allocation4 + $0x1], 1 }

</bundles_post_ra>
